<compile_context>
chip_gen: v7x
topology: tpu7x:2x2x1
jax: 0.10.0
libtpu: 0.0.40
codegen_flags: <defaults>
</compile_context>

<pallas_src>
import functools

import jax
import jax.numpy as jnp
from jax.experimental import pallas as pl
from jax.experimental.pallas import tpu as pltpu


_TARGET_BLOCK_BYTES = 4 * 1024 * 1024     # ~4 MiB x-blocks (review: 2-4 MiB sweet spot)
_VMEM_LIMIT_BYTES = 40 * 1024 * 1024      # > 4*block_bytes of pass 2 + slack, < v7x 64 MiB


def _cdiv(a, b):
    return (a + b - 1) // b


def _pick_tiles(nc, s, itemsize):
    """Pick (row_block, spatial_tile) so row_block*spatial_tile*itemsize ~ target bytes."""
    sub = {4: 8, 2: 16, 1: 32}.get(itemsize, 8)
    target_elems = max(_TARGET_BLOCK_BYTES // itemsize, sub * 128)
    # Lane tile: as wide as possible (multiple of 128) at the minimum row count,
    # or the full spatial extent when it already fits the budget.
    lane_budget = max(128, (target_elems // sub) // 128 * 128)
    ts = s if s <= lane_budget else lane_budget
    # Rows: fill the remaining byte budget; full row extent is always a legal block.
    row_budget = max(sub, (target_elems // max(ts, 1)) // sub * sub)
    rb = nc if nc <= row_budget else row_budget
    return rb, ts


# ---------------------------------------------------------------------------
# Pass 1: tiled per-row spatial sum (rows = (n, c) pairs), split into per-core
# partial sums along a leading parallel axis.
# ---------------------------------------------------------------------------
def _sum_kernel(x_ref, psum_ref, *, ts, s_total, needs_mask):
    # x_ref   : (RB, TS)    one tile of rows x spatial
    # psum_ref: (1, RB, 1)  f32 partial-sum accumulator, resident across axis 2
    j = pl.program_id(2)

    @pl.when(j == 0)
    def _():
        psum_ref[...] = jnp.zeros_like(psum_ref)

    x = x_ref[...].astype(jnp.float32)
    if needs_mask:
        # Global (unclamped) spatial position of this tile; zero out lanes past S
        # (covers both the ragged last tile and duplicated clamped tiles).
        tile = pl.program_id(0) * pl.num_programs(2) + j
        col = tile * ts + jax.lax.broadcasted_iota(jnp.int32, x_ref.shape, 1)
        x = jnp.where(col < s_total, x, 0.0)

    psum_ref[...] += jnp.sum(x, axis=-1, keepdims=True)[None]


def _reduce_pass(x2, *, rb, ts, n_split):
    nr, s = x2.shape
    n_tiles = _cdiv(s, ts)
    tiles_per_split = _cdiv(n_tiles, n_split)
    row_blocks = _cdiv(nr, rb)
    needs_mask = (s % ts != 0) or (n_split * tiles_per_split != n_tiles)

    def x_map(p, i, j):
        t = p * tiles_per_split + j
        if needs_mask:
            # Keep the DMA in-range; the kernel mask zeroes any duplicated tile.
            t = jnp.minimum(t, n_tiles - 1)
        return (i, t)

    kernel = functools.partial(_sum_kernel, ts=ts, s_total=s, needs_mask=needs_mask)
    return pl.pallas_call(
        kernel,
        out_shape=jax.ShapeDtypeStruct((n_split, nr, 1), jnp.float32),
        grid=(n_split, row_blocks, tiles_per_split),
        in_specs=[pl.BlockSpec((rb, ts), x_map)],
        out_specs=pl.BlockSpec((1, rb, 1), lambda p, i, j: (p, i, 0)),
        compiler_params=pltpu.CompilerParams(
            dimension_semantics=("parallel", "parallel", "arbitrary"),
            vmem_limit_bytes=_VMEM_LIMIT_BYTES),
    )(x2)


# ---------------------------------------------------------------------------
# Pass 2: out = x * scale, scale = 1 + softmax(conv(mean)) per (n, c) row.
# ---------------------------------------------------------------------------
def _scale_kernel(scale_ref, x_ref, out_ref):
    # scale_ref: (RB, 1) f32, x_ref/out_ref: (RB, TS); one mul + cast per element.
    out_ref[...] = (x_ref[...].astype(jnp.float32) * scale_ref[...]).astype(out_ref.dtype)


def _scale_pass(scale, x2, *, rb, ts):
    nr, s = x2.shape
    return pl.pallas_call(
        _scale_kernel,
        out_shape=jax.ShapeDtypeStruct((nr, s), x2.dtype),
        grid=(_cdiv(nr, rb), _cdiv(s, ts)),
        in_specs=[
            pl.BlockSpec((rb, 1), lambda i, j: (i, 0)),    # per-row scale
            pl.BlockSpec((rb, ts), lambda i, j: (i, j)),   # x tile
        ],
        out_specs=pl.BlockSpec((rb, ts), lambda i, j: (i, j)),
        compiler_params=pltpu.CompilerParams(
            dimension_semantics=("parallel", "parallel"),
            vmem_limit_bytes=_VMEM_LIMIT_BYTES),
    )(scale, x2)


@jax.jit
def prior_conv_block(x_ncdhw, conv_w):
    """x_ncdhw: (N, C, D, H, W); conv_w: (1, 1, 3).  Returns (out, mapx)."""
    N, C, D, H, W = x_ncdhw.shape
    S = D * H * W
    NC = N * C
    dt = x_ncdhw.dtype
    itemsize = jnp.dtype(dt).itemsize

    rb, ts = _pick_tiles(NC, S, itemsize)
    n_tiles = _cdiv(S, ts)
    n_split = 2 if n_tiles >= 2 else 1   # 2 partial sums -> both v7x TCs busy in pass 1

    x2 = x_ncdhw.reshape(NC, S)          # pure reshape: no pad, no copy

    # ---- pass 1 (Pallas): per-(n, c) spatial partial sums, f32 ----
    partials = _reduce_pass(x2, rb=rb, ts=ts, n_split=n_split)   # (n_split, NC, 1)
    sums = jnp.sum(partials[:, :, 0], axis=0)                    # (NC,)
    mean = (sums * (1.0 / jnp.float32(S))).reshape(N, C)         # (N, C)

    # ---- tiny (N, C) work in plain JAX: 3-tap channel conv + softmax ----
    w = conv_w.reshape(3).astype(jnp.float32)
    mp = jnp.pad(mean, ((0, 0), (1, 1)))                         # zero-padded channels
    y = w[0] * mp[:, :-2] + w[1] * mp[:, 1:-1] + w[2] * mp[:, 2:]
    mapx = jax.nn.softmax(y, axis=1)                             # (N, C) f32

    # ---- pass 2 (Pallas): out = x * (1 + map) ----
    scale = (1.0 + mapx).reshape(NC, 1)                          # f32 per-row scale
    out2 = _scale_pass(scale, x2, rb=rb, ts=ts)
    out = out2.reshape(N, C, D, H, W)

    return out, mapx.astype(dt)


def _reference(x, conv_w):
    """Pure-JAX reference mirroring the PyTorch forward."""
    w = conv_w.reshape(3)
    y = jnp.mean(x, axis=(2, 3, 4))                              # (N, C)
    yp = jnp.pad(y, ((0, 0), (1, 1)))
    yc = w[0] * yp[:, :-2] + w[1] * yp[:, 1:-1] + w[2] * yp[:, 2:]
    sm = jax.nn.softmax(yc, axis=1)
    out = x + x * sm[:, :, None, None, None]
    return out, sm


if __name__ == "__main__":
    key = jax.random.PRNGKey(0)
    kx, kw = jax.random.split(key)

    # Small NCDHW shapes: S = D*H*W = 256, N*C = 8 rows.
    N, C, D, H, W = 2, 4, 4, 8, 8
    x = jax.random.normal(kx, (N, C, D, H, W), dtype=jnp.float32)

    # Deterministic Conv1d(1, 1, 3, bias=False) weight (kaiming-uniform-like bound).
    bound = 1.0 / jnp.sqrt(3.0)
    conv_w = jax.random.uniform(kw, (1, 1, 3), jnp.float32, minval=-bound, maxval=bound)

    out, mapx = prior_conv_block(x, conv_w)
    out = jax.block_until_ready(out)
    mapx = jax.block_until_ready(mapx)

    ref_out, ref_map = _reference(x, conv_w)
    assert out.shape == (N, C, D, H, W) and mapx.shape == (N, C)
    assert jnp.allclose(out, ref_out, atol=1e-5, rtol=1e-5)
    assert jnp.allclose(mapx, ref_map, atol=1e-5, rtol=1e-5)

    print("KERNEL_OK")
</pallas_src>

<mosaic_0001>
module attributes {stable_mosaic.version = 11 : i64} {
  func.func @_sum_kernel(%arg0: i32, %arg1: i32, %arg2: i32, %arg3: memref<8x256xf32, #tpu.memory_space<vmem>>, %arg4: memref<1x8x1xf32, #tpu.memory_space<vmem>>) attributes {dimension_semantics = [#tpu.dimension_semantics<parallel>, #tpu.dimension_semantics<parallel>, #tpu.dimension_semantics<arbitrary>], iteration_bounds = array<i64: 1, 1, 1>, scalar_prefetch = 0 : i64, scratch_operands = 0 : i64, tpu.core_type = #tpu.core_type<tc>, window_params = [{transform_indices = @transform_0, window_bounds = array<i64: 8, 256>}, {transform_indices = @transform_1, window_bounds = array<i64: 1, 8, 1>}]} {
    %c0_i32 = arith.constant 0 : i32
    %0 = arith.cmpi eq, %arg2, %c0_i32 : i32
    %1 = arith.extui %0 : i1 to i32
    %c0_i32_0 = arith.constant 0 : i32
    %2 = arith.cmpi ne, %1, %c0_i32_0 : i32
    scf.if %2 {
      %cst_8 = arith.constant 0.000000e+00 : f32
      %10 = vector.broadcast %cst_8 : f32 to vector<1x8x1xf32>
      %c0_9 = arith.constant 0 : index
      %c0_10 = arith.constant 0 : index
      %c0_11 = arith.constant 0 : index
      %11 = vector.load %arg4[%c0_9, %c0_10, %c0_11] : memref<1x8x1xf32, #tpu.memory_space<vmem>>, vector<1x8x1xf32>
      tpu.vector_store %arg4[%c0_9, %c0_10, %c0_11], %10 {strides = array<i32>} : memref<1x8x1xf32, #tpu.memory_space<vmem>>, vector<1x8x1xf32>,
    } else {
    }
    %c0 = arith.constant 0 : index
    %c0_1 = arith.constant 0 : index
    %3 = vector.load %arg3[%c0, %c0_1] : memref<8x256xf32, #tpu.memory_space<vmem>>, vector<8x256xf32>
    %c0_2 = arith.constant 0 : index
    %c0_3 = arith.constant 0 : index
    %c0_4 = arith.constant 0 : index
    %4 = vector.load %arg4[%c0_2, %c0_3, %c0_4] : memref<1x8x1xf32, #tpu.memory_space<vmem>>, vector<1x8x1xf32>
    %cst = arith.constant dense<0.000000e+00> : vector<8xf32>
    %5 = vector.multi_reduction <add>, %3, %cst [1] : vector<8x256xf32> to vector<8xf32>
    %6 = vector.shape_cast %5 : vector<8xf32> to vector<8x1xf32>
    %7 = vector.shape_cast %6 : vector<8x1xf32> to vector<1x8x1xf32>
    %8 = arith.addf %4, %7 : vector<1x8x1xf32>
    %c0_5 = arith.constant 0 : index
    %c0_6 = arith.constant 0 : index
    %c0_7 = arith.constant 0 : index
    %9 = vector.load %arg4[%c0_5, %c0_6, %c0_7] : memref<1x8x1xf32, #tpu.memory_space<vmem>>, vector<1x8x1xf32>
    tpu.vector_store %arg4[%c0_5, %c0_6, %c0_7], %8 {strides = array<i32>} : memref<1x8x1xf32, #tpu.memory_space<vmem>>, vector<1x8x1xf32>,
    return
  }
  func.func @transform_0(%arg0: i32, %arg1: i32, %arg2: i32) -> (i32, i32) {
    %c1_i32 = arith.constant 1 : i32
    %0 = arith.muli %arg0, %c1_i32 : i32
    %1 = arith.addi %0, %arg2 : i32
    %c0_i32 = arith.constant 0 : i32
    return %arg1, %1 : i32, i32
  }
  func.func @transform_1(%arg0: i32, %arg1: i32, %arg2: i32) -> (i32, i32, i32) {
    %c0_i32 = arith.constant 0 : i32
    %c0_i32_0 = arith.constant 0 : i32
    return %arg0, %arg1, %c0_i32 : i32, i32, i32
  }
}

module attributes {stable_mosaic.version = 11 : i64} {
  func.func @_scale_kernel(%arg0: i32, %arg1: i32, %arg2: memref<8x1xf32, #tpu.memory_space<vmem>>, %arg3: memref<8x256xf32, #tpu.memory_space<vmem>>, %arg4: memref<8x256xf32, #tpu.memory_space<vmem>>) attributes {dimension_semantics = [#tpu.dimension_semantics<parallel>, #tpu.dimension_semantics<parallel>], iteration_bounds = array<i64: 1, 1>, scalar_prefetch = 0 : i64, scratch_operands = 0 : i64, tpu.core_type = #tpu.core_type<tc>, window_params = [{transform_indices = @transform_0, window_bounds = array<i64: 8, 1>}, {transform_indices = @transform_1, window_bounds = array<i64: 8, 256>}, {transform_indices = @transform_2, window_bounds = array<i64: 8, 256>}]} {
    %c0 = arith.constant 0 : index
    %c0_0 = arith.constant 0 : index
    %0 = vector.load %arg3[%c0, %c0_0] : memref<8x256xf32, #tpu.memory_space<vmem>>, vector<8x256xf32>
    %c0_1 = arith.constant 0 : index
    %c0_2 = arith.constant 0 : index
    %1 = vector.load %arg2[%c0_1, %c0_2] : memref<8x1xf32, #tpu.memory_space<vmem>>, vector<8x1xf32>
    %2 = vector.broadcast %1 : vector<8x1xf32> to vector<8x256xf32>
    %3 = arith.mulf %0, %2 : vector<8x256xf32>
    %c0_3 = arith.constant 0 : index
    %c0_4 = arith.constant 0 : index
    %4 = vector.load %arg4[%c0_3, %c0_4] : memref<8x256xf32, #tpu.memory_space<vmem>>, vector<8x256xf32>
    tpu.vector_store %arg4[%c0_3, %c0_4], %3 {strides = array<i32>} : memref<8x256xf32, #tpu.memory_space<vmem>>, vector<8x256xf32>,
    return
  }
  func.func @transform_0(%arg0: i32, %arg1: i32) -> (i32, i32) {
    %c0_i32 = arith.constant 0 : i32
    %c0_i32_0 = arith.constant 0 : i32
    return %arg0, %c0_i32 : i32, i32
  }
  func.func @transform_1(%arg0: i32, %arg1: i32) -> (i32, i32) {
    %c0_i32 = arith.constant 0 : i32
    return %arg0, %arg1 : i32, i32
  }
  func.func @transform_2(%arg0: i32, %arg1: i32) -> (i32, i32) {
    %c0_i32 = arith.constant 0 : i32
    return %arg0, %arg1 : i32, i32
  }
}

</mosaic_0001>

<bundles_post_ra>
// kernel: prior_conv_block.2
= control target key start
LH: loop header
LB: loop body
LE: loop exit
PB: predicated region body
PF: predicated region fallthrough
CT: control target
= control target key end

     0   :  { %vm34_vm0 = vcmask 7168   ;;  %v56_v2 = vmov 0.0   ;;  %s82_s0 = inlined_call_operand.vmem [shape: f32[8,256], index: 0, kind: input, shape index: {}]   ;;  %s83_s1 = inlined_call_operand.vmem [shape: f32[1,8,1], index: 1, kind: output, shape index: {}]  }
   0x1   :  { %v36_v0 = vld [vmem:[%s82_s0] sm:$0xff]  ;;  %v37_v1 = vld [vmem:[%s82_s0 + $0x8] sm:$0xff]  ;;  %35 = vst.msk [vmem:[%s83_s1] sm:$0xff] %vm34_vm0, %v56_v2 }
   0x2   :  { %v39_v3 = vadd.f32 %v37_v1, %v36_v0 }
   0x4   :  { %40 = vadd.xlane.f32.xlu0 %v39_v3 }
   0x8   :  { %v38_v4 = vld [vmem:[%s83_s1] sm:$0xff] }
  0x91   :  { %v41_v5 = vpop.xlane.xlu0 %40 }
  0x92   :  { %v42_v6 = vadd.f32 %v41_v5, %v38_v4 }
  0x94   :  { %44 = vst.msk [vmem:[%s83_s1] sm:$0xff] %vm34_vm0, %v42_v6 }

// kernel: prior_conv_block.3
= control target key start
LH: loop header
LB: loop body
LE: loop exit
PB: predicated region body
PF: predicated region fallthrough
CT: control target
= control target key end

     0   :  { %v29_v0 = vmov 0   ;;  %s60_s0 = inlined_call_operand.vmem [shape: f32[8,1], index: 0, kind: input, shape index: {}]   ;;  %s61_s1 = inlined_call_operand.vmem [shape: f32[8,256], index: 1, kind: input, shape index: {}]   ;;  %s62_s2 = inlined_call_operand.vmem [shape: f32[8,256], index: 2, kind: output, shape index: {}]  }
   0x1   :  { %28 = vset.pattern.permute.xlu0 %v29_v0  ;;  %v13_v1 = vld [vmem:[%s60_s0] sm:$0xff]  ;;  %v12_v3 = vld [vmem:[%s61_s1 + $0x8] sm:$0xff] }
   0x2   :  { %16 = vperm.xlu0 %28, %v13_v1   ;;  %v11_v2 = vld [vmem:[%s61_s1] sm:$0xff] }
  0x81   :  { %v17_v4 = vpop.permute.xlu0 %16 }
  0x82   :  { %v19_v5 = vmul.f32 %v17_v4, %v11_v2  ;;  %v20_v6 = vmul.f32 %v17_v4, %v12_v3 }
  0x84   :  { %21 = vst [vmem:[%s62_s2] sm:$0xff] %v19_v5  ;;  %22 = vst [vmem:[%s62_s2 + $0x8] sm:$0xff] %v20_v6 }

</bundles_post_ra>
